<compile_context>
chip_gen: v5e
topology: v5e:2x2
jax: 0.10.0
libtpu: 0.0.40
codegen_flags: <defaults>
</compile_context>

<pallas_src>
import math
import jax
import jax.numpy as jnp
from jax import lax
from jax.experimental import pallas as pl
from jax.experimental.pallas import tpu as pltpu

_INV_SQRT2 = 1.0 / math.sqrt(2.0)


def _round_up(x, m):
    return (x + m - 1) // m * m


def _gelu_exact_f32(x):
    # Exact GELU (matches torch.nn.GELU default): 0.5 * x * (1 + erf(x / sqrt(2)))
    return 0.5 * x * (1.0 + lax.erf(x * _INV_SQRT2))


def mlp_head_kernel(x_ref, w1_ref, b1_ref, w2_ref, b2_ref, w3_ref, b3_ref, o_ref):
    # x tile and weights arrive as bf16; accumulation / bias / GELU in f32.
    h = jnp.dot(x_ref[...], w1_ref[...], preferred_element_type=jnp.float32)
    h = _gelu_exact_f32(h + b1_ref[...])
    h = jnp.dot(h.astype(jnp.bfloat16), w2_ref[...], preferred_element_type=jnp.float32)
    h = _gelu_exact_f32(h + b2_ref[...])
    o = jnp.dot(h.astype(jnp.bfloat16), w3_ref[...], preferred_element_type=jnp.float32)
    o = o + b3_ref[...]
    o_ref[...] = o.astype(o_ref.dtype)


def mlp_head(x, w1, b1, w2, b2, w3, b3, *, tile_b=256, out_dtype=jnp.float32):
    """Fused MLP head.

    x:  [B, in_dim]
    wN: [in_features, out_features]  (transpose of nn.Linear.weight)
    bN: [1, out_features]
    """
    B, in_dim = x.shape
    hidden = w1.shape[1]
    out_dim = w3.shape[1]

    # ---- lane-dense output: pad out_dim up to a multiple of 128 --------------
    out_pad = _round_up(out_dim, 128)
    if out_pad != out_dim:
        w3 = jnp.pad(w3, ((0, 0), (0, out_pad - out_dim)))
        b3 = jnp.pad(b3, ((0, 0), (0, out_pad - out_dim)))

    # ---- bf16 matmul inputs, f32 biases ---------------------------------------
    xb = x.astype(jnp.bfloat16)
    w1b = w1.astype(jnp.bfloat16)
    w2b = w2.astype(jnp.bfloat16)
    w3b = w3.astype(jnp.bfloat16)
    b1f = b1.astype(jnp.float32)
    b2f = b2.astype(jnp.float32)
    b3f = b3.astype(jnp.float32)

    # ---- batch tiling: MXU-friendly tile, pad B instead of asserting ----------
    # Multiple of 16 keeps the bf16 sublane pack happy; don't pad tiny batches
    # all the way up to tile_b.
    tb = min(max(tile_b, 16), _round_up(B, 16))
    tb = _round_up(tb, 16)
    B_pad = _round_up(B, tb)
    if B_pad != B:
        xb = jnp.pad(xb, ((0, B_pad - B), (0, 0)))

    grid = (B_pad // tb,)
    full = lambda i: (0, 0)

    # ---- explicit VMEM budget --------------------------------------------------
    # Weight/bias blocks have constant index_maps but the default pipeline still
    # double-buffers them, so budget 2x.
    # TODO(synk): single-buffer the constant weight blocks (pipeline_mode=pl.Buffered(1))
    # once pinned to a JAX version that accepts buffer_count=1 on TPU.
    wbytes = 2 * 2 * (in_dim * hidden + hidden * hidden + hidden * out_pad)   # bf16, 2 bufs
    bbytes = 2 * 4 * (hidden + hidden + out_pad)                              # f32,  2 bufs
    iobytes = 2 * (tb * in_dim * 2) + 2 * (tb * out_pad * 4)                  # x / out tiles
    actbytes = 3 * 4 * tb * max(hidden, out_pad)                              # f32 intermediates
    vmem_limit = min(max(2 * (wbytes + bbytes + iobytes + actbytes), 32 << 20), 128 << 20)

    out_padded = pl.pallas_call(
        mlp_head_kernel,
        out_shape=jax.ShapeDtypeStruct((B_pad, out_pad), out_dtype),
        grid_spec=pltpu.PrefetchScalarGridSpec(
            num_scalar_prefetch=0,
            grid=grid,
            in_specs=[
                pl.BlockSpec((tb, in_dim), lambda i: (i, 0)),   # x tile
                pl.BlockSpec((in_dim, hidden), full),           # W1 (resident)
                pl.BlockSpec((1, hidden), full),                # b1
                pl.BlockSpec((hidden, hidden), full),           # W2 (resident)
                pl.BlockSpec((1, hidden), full),                # b2
                pl.BlockSpec((hidden, out_pad), full),          # W3 (resident)
                pl.BlockSpec((1, out_pad), full),               # b3
            ],
            out_specs=pl.BlockSpec((tb, out_pad), lambda i: (i, 0)),
        ),
        compiler_params=pltpu.CompilerParams(
            dimension_semantics=("parallel",),
            vmem_limit_bytes=vmem_limit,
        ),
    )(xb, w1b, b1f, w2b, b2f, w3b, b3f)

    return out_padded[:B, :out_dim]


def init_mlp_head_params(key, in_dim, hidden_dim, out_dim, dtype=jnp.float32):
    """Deterministic synthetic init mirroring MLPHead._init_weights:
    trunc_normal(std=0.02) weights (truncated to [-2, 2]), zero biases."""
    k1, k2, k3 = jax.random.split(key, 3)

    def trunc(k, shape):
        return (jax.random.truncated_normal(k, -2.0, 2.0, shape, dtype=jnp.float32) * 0.02).astype(dtype)

    w1 = trunc(k1, (in_dim, hidden_dim))
    b1 = jnp.zeros((1, hidden_dim), dtype)
    w2 = trunc(k2, (hidden_dim, hidden_dim))
    b2 = jnp.zeros((1, hidden_dim), dtype)
    w3 = trunc(k3, (hidden_dim, out_dim))
    b3 = jnp.zeros((1, out_dim), dtype)
    return w1, b1, w2, b2, w3, b3


def mlp_head_ref_bf16(x, w1, b1, w2, b2, w3, b3):
    """Pure-JAX reference mirroring the kernel's bf16-input / f32-accumulate math."""
    h = jnp.dot(x.astype(jnp.bfloat16), w1.astype(jnp.bfloat16),
                preferred_element_type=jnp.float32) + b1
    h = _gelu_exact_f32(h)
    h = jnp.dot(h.astype(jnp.bfloat16), w2.astype(jnp.bfloat16),
                preferred_element_type=jnp.float32) + b2
    h = _gelu_exact_f32(h)
    return jnp.dot(h.astype(jnp.bfloat16), w3.astype(jnp.bfloat16),
                   preferred_element_type=jnp.float32) + b3


def mlp_head_ref_f32(x, w1, b1, w2, b2, w3, b3):
    """Full-precision reference of the original PyTorch forward."""
    h = jax.nn.gelu(x @ w1 + b1, approximate=False)
    h = jax.nn.gelu(h @ w2 + b2, approximate=False)
    return h @ w3 + b3


if __name__ == "__main__":
    # Small shapes consistent with MLPHead(in_dim, hidden_dim, out_dim)
    B, IN_DIM, HIDDEN, OUT_DIM = 8, 32, 64, 256

    key = jax.random.PRNGKey(0)
    kx, kp = jax.random.split(key)
    x = jax.random.normal(kx, (B, IN_DIM), dtype=jnp.float32)
    params = init_mlp_head_params(kp, IN_DIM, HIDDEN, OUT_DIM)

    out = jax.block_until_ready(mlp_head(x, *params))
    assert out.shape == (B, OUT_DIM)
    assert out.dtype == jnp.float32

    # Tight check vs a reference that uses the same bf16-in / f32-accumulate math.
    ref_bf16 = mlp_head_ref_bf16(x, *params)
    assert jnp.allclose(out, ref_bf16, atol=2e-3, rtol=2e-2), "mismatch vs bf16-matched reference"

    # Loose check vs the full-f32 PyTorch-equivalent forward (bf16 input rounding only).
    ref_f32 = mlp_head_ref_f32(x, *params)
    assert jnp.allclose(out, ref_f32, atol=2e-2, rtol=2e-1), "mismatch vs f32 reference"

    print("KERNEL_OK")
</pallas_src>

<mosaic_0001>
module attributes {stable_mosaic.version = 11 : i64} {
  func.func @mlp_head_kernel(%arg0: i32, %arg1: memref<16x32xbf16, #tpu.memory_space<vmem>>, %arg2: memref<32x64xbf16, #tpu.memory_space<vmem>>, %arg3: memref<1x64xf32, #tpu.memory_space<vmem>>, %arg4: memref<64x64xbf16, #tpu.memory_space<vmem>>, %arg5: memref<1x64xf32, #tpu.memory_space<vmem>>, %arg6: memref<64x256xbf16, #tpu.memory_space<vmem>>, %arg7: memref<1x256xf32, #tpu.memory_space<vmem>>, %arg8: memref<16x256xf32, #tpu.memory_space<vmem>>) attributes {dimension_semantics = [#tpu.dimension_semantics<parallel>], iteration_bounds = array<i64: 1>, scalar_prefetch = 0 : i64, scratch_operands = 0 : i64, tpu.core_type = #tpu.core_type<tc>, window_params = [{transform_indices = @transform_0, window_bounds = array<i64: 16, 32>}, {pipeline_mode = #tpu.pipeline_mode<synchronous>, transform_indices = @transform_1, window_bounds = array<i64: 32, 64>}, {pipeline_mode = #tpu.pipeline_mode<synchronous>, transform_indices = @transform_2, window_bounds = array<i64: 1, 64>}, {pipeline_mode = #tpu.pipeline_mode<synchronous>, transform_indices = @transform_3, window_bounds = array<i64: 64, 64>}, {pipeline_mode = #tpu.pipeline_mode<synchronous>, transform_indices = @transform_4, window_bounds = array<i64: 1, 64>}, {pipeline_mode = #tpu.pipeline_mode<synchronous>, transform_indices = @transform_5, window_bounds = array<i64: 64, 256>}, {pipeline_mode = #tpu.pipeline_mode<synchronous>, transform_indices = @transform_6, window_bounds = array<i64: 1, 256>}, {transform_indices = @transform_7, window_bounds = array<i64: 16, 256>}]} {
    %c0 = arith.constant 0 : index
    %c0_0 = arith.constant 0 : index
    %0 = vector.load %arg1[%c0, %c0_0] : memref<16x32xbf16, #tpu.memory_space<vmem>>, vector<16x32xbf16>
    %c0_1 = arith.constant 0 : index
    %c0_2 = arith.constant 0 : index
    %1 = vector.load %arg2[%c0_1, %c0_2] : memref<32x64xbf16, #tpu.memory_space<vmem>>, vector<32x64xbf16>
    %cst = arith.constant dense<0.000000e+00> : vector<16x64xf32>
    %2 = tpu.matmul %0, %1, %cst {dimension_numbers = #tpu.dot_dimension_numbers<[1], [0], [0], [1], [0, 0, 1, 1], [], []>} : vector<16x32xbf16>, vector<32x64xbf16>, vector<16x64xf32> -> vector<16x64xf32>
    %c0_3 = arith.constant 0 : index
    %c0_4 = arith.constant 0 : index
    %3 = vector.load %arg3[%c0_3, %c0_4] : memref<1x64xf32, #tpu.memory_space<vmem>>, vector<1x64xf32>
    %4 = vector.broadcast %3 : vector<1x64xf32> to vector<16x64xf32>
    %5 = arith.addf %2, %4 : vector<16x64xf32>
    %cst_5 = arith.constant 5.000000e-01 : f32
    %6 = vector.broadcast %cst_5 : f32 to vector<16x64xf32>
    %7 = arith.mulf %6, %5 : vector<16x64xf32>
    %cst_6 = arith.constant 0.707106769 : f32
    %8 = vector.broadcast %cst_6 : f32 to vector<16x64xf32>
    %9 = arith.mulf %5, %8 : vector<16x64xf32>
    %10 = math.erf %9 : vector<16x64xf32>
    %cst_7 = arith.constant 1.000000e+00 : f32
    %11 = vector.broadcast %cst_7 : f32 to vector<16x64xf32>
    %12 = arith.addf %11, %10 : vector<16x64xf32>
    %13 = arith.mulf %7, %12 : vector<16x64xf32>
    %14 = arith.truncf %13 : vector<16x64xf32> to vector<16x64xbf16>
    %c0_8 = arith.constant 0 : index
    %c0_9 = arith.constant 0 : index
    %15 = vector.load %arg4[%c0_8, %c0_9] : memref<64x64xbf16, #tpu.memory_space<vmem>>, vector<64x64xbf16>
    %cst_10 = arith.constant dense<0.000000e+00> : vector<16x64xf32>
    %16 = tpu.matmul %14, %15, %cst_10 {dimension_numbers = #tpu.dot_dimension_numbers<[1], [0], [0], [1], [0, 0, 1, 1], [], []>} : vector<16x64xbf16>, vector<64x64xbf16>, vector<16x64xf32> -> vector<16x64xf32>
    %c0_11 = arith.constant 0 : index
    %c0_12 = arith.constant 0 : index
    %17 = vector.load %arg5[%c0_11, %c0_12] : memref<1x64xf32, #tpu.memory_space<vmem>>, vector<1x64xf32>
    %18 = vector.broadcast %17 : vector<1x64xf32> to vector<16x64xf32>
    %19 = arith.addf %16, %18 : vector<16x64xf32>
    %cst_13 = arith.constant 5.000000e-01 : f32
    %20 = vector.broadcast %cst_13 : f32 to vector<16x64xf32>
    %21 = arith.mulf %20, %19 : vector<16x64xf32>
    %cst_14 = arith.constant 0.707106769 : f32
    %22 = vector.broadcast %cst_14 : f32 to vector<16x64xf32>
    %23 = arith.mulf %19, %22 : vector<16x64xf32>
    %24 = math.erf %23 : vector<16x64xf32>
    %cst_15 = arith.constant 1.000000e+00 : f32
    %25 = vector.broadcast %cst_15 : f32 to vector<16x64xf32>
    %26 = arith.addf %25, %24 : vector<16x64xf32>
    %27 = arith.mulf %21, %26 : vector<16x64xf32>
    %28 = arith.truncf %27 : vector<16x64xf32> to vector<16x64xbf16>
    %c0_16 = arith.constant 0 : index
    %c0_17 = arith.constant 0 : index
    %29 = vector.load %arg6[%c0_16, %c0_17] : memref<64x256xbf16, #tpu.memory_space<vmem>>, vector<64x256xbf16>
    %cst_18 = arith.constant dense<0.000000e+00> : vector<16x256xf32>
    %30 = tpu.matmul %28, %29, %cst_18 {dimension_numbers = #tpu.dot_dimension_numbers<[1], [0], [0], [1], [0, 0, 1, 1], [], []>} : vector<16x64xbf16>, vector<64x256xbf16>, vector<16x256xf32> -> vector<16x256xf32>
    %c0_19 = arith.constant 0 : index
    %c0_20 = arith.constant 0 : index
    %31 = vector.load %arg7[%c0_19, %c0_20] : memref<1x256xf32, #tpu.memory_space<vmem>>, vector<1x256xf32>
    %32 = vector.broadcast %31 : vector<1x256xf32> to vector<16x256xf32>
    %33 = arith.addf %30, %32 : vector<16x256xf32>
    %c0_21 = arith.constant 0 : index
    %c0_22 = arith.constant 0 : index
    %34 = vector.load %arg8[%c0_21, %c0_22] : memref<16x256xf32, #tpu.memory_space<vmem>>, vector<16x256xf32>
    tpu.vector_store %arg8[%c0_21, %c0_22], %33 {strides = array<i32>} : memref<16x256xf32, #tpu.memory_space<vmem>>, vector<16x256xf32>,
    return
  }
  func.func @transform_0(%arg0: i32) -> (i32, i32) {
    %c0_i32 = arith.constant 0 : i32
    %c0_i32_0 = arith.constant 0 : i32
    return %arg0, %c0_i32 : i32, i32
  }
  func.func @transform_1(%arg0: i32) -> (i32, i32) {
    %c0_i32 = arith.constant 0 : i32
    %c0_i32_0 = arith.constant 0 : i32
    %c0_i32_1 = arith.constant 0 : i32
    return %c0_i32, %c0_i32_0 : i32, i32
  }
  func.func @transform_2(%arg0: i32) -> (i32, i32) {
    %c0_i32 = arith.constant 0 : i32
    %c0_i32_0 = arith.constant 0 : i32
    %c0_i32_1 = arith.constant 0 : i32
    return %c0_i32, %c0_i32_0 : i32, i32
  }
  func.func @transform_3(%arg0: i32) -> (i32, i32) {
    %c0_i32 = arith.constant 0 : i32
    %c0_i32_0 = arith.constant 0 : i32
    %c0_i32_1 = arith.constant 0 : i32
    return %c0_i32, %c0_i32_0 : i32, i32
  }
  func.func @transform_4(%arg0: i32) -> (i32, i32) {
    %c0_i32 = arith.constant 0 : i32
    %c0_i32_0 = arith.constant 0 : i32
    %c0_i32_1 = arith.constant 0 : i32
    return %c0_i32, %c0_i32_0 : i32, i32
  }
  func.func @transform_5(%arg0: i32) -> (i32, i32) {
    %c0_i32 = arith.constant 0 : i32
    %c0_i32_0 = arith.constant 0 : i32
    %c0_i32_1 = arith.constant 0 : i32
    return %c0_i32, %c0_i32_0 : i32, i32
  }
  func.func @transform_6(%arg0: i32) -> (i32, i32) {
    %c0_i32 = arith.constant 0 : i32
    %c0_i32_0 = arith.constant 0 : i32
    %c0_i32_1 = arith.constant 0 : i32
    return %c0_i32, %c0_i32_0 : i32, i32
  }
  func.func @transform_7(%arg0: i32) -> (i32, i32) {
    %c0_i32 = arith.constant 0 : i32
    %c0_i32_0 = arith.constant 0 : i32
    return %arg0, %c0_i32 : i32, i32
  }
}

</mosaic_0001>

<bundles_post_ra>
// kernel: tpu_custom_call.1
= control target key start
LH: loop header
LB: loop body
LE: loop exit
PB: predicated region body
PF: predicated region fallthrough
CT: control target
= control target key end

     0   :  { %12 = vsyncpa [#allocation3], 0  ;;  %s887_s0 = inlined_call_operand.hbm [shape: bf16[16,32], index: 0, kind: input, shape index: {}]   ;;  %s888_s1 = inlined_call_operand.hbm [shape: bf16[32,64], index: 1, kind: input, shape index: {}]   ;;  %s889_s2 = inlined_call_operand.vmem [shape: f32[1,64], index: 2, kind: input, shape index: {}]   ;;  %s890_s3 = inlined_call_operand.hbm [shape: bf16[64,64], index: 3, kind: input, shape index: {}]   ;;  %s891_s4 = inlined_call_operand.hbm [shape: f32[1,64], index: 4, kind: input, shape index: {}]   ;;  %s892_s5 = inlined_call_operand.hbm [shape: bf16[64,256], index: 5, kind: input, shape index: {}]   ;;  %s893_s6 = inlined_call_operand.vmem [shape: f32[1,256], index: 6, kind: input, shape index: {}]   ;;  %s894_s7 = inlined_call_operand.hbm [shape: f32[16,256], index: 7, kind: output, shape index: {}]  }
   0x1   :  { %13 = vsyncpa [#allocation6], 0 }
   0x2   :  { %14 = vsyncpa [#allocation9], 0 }
   0x3   :  { %15 = vsyncpa [#allocation4], 0  ;;  %s33_s26 = sshll.u32 %s888_s1, 4  ;;  %s748_s27 = smov [#allocation5]   ;;  %s34_s26 = int_to_ptr.hbm [resolvable:$true] %s33_s26 }
   0x4   :  { %s35_s28 = sshll.u32 %s748_s27, 4  ;;  %s62_s8 = sshll.u32 %s891_s4, 4  ;;  %s36_s28 = int_to_ptr.vmem [resolvable:$true] %s35_s28  ;;  %s63_s8 = int_to_ptr.hbm [resolvable:$true] %s62_s8 }
   0x5   :  { %s749_s9 = smov 64   ;;  %s750_s10 = smov 4  }
   0x6   :  { %41 = dma.hbm_to_vmem [thread:$0]  %s34_s26, 256, %s36_s28, [#allocation6], %s749_s9, %s749_s9, %s750_s10  }
   0x7   :  { %s751_s11 = smov [#allocation8]   ;;  %s20_s15 = sshll.u32 %s887_s0, 4  ;;  %s21_s15 = int_to_ptr.hbm [resolvable:$true] %s20_s15 }
   0x8   :  { %s64_s12 = sshll.u32 %s751_s11, 4  ;;  %s48_s17 = sshll.u32 %s890_s3, 4  ;;  %s65_s12 = int_to_ptr.vmem [resolvable:$true] %s64_s12  ;;  %s49_s17 = int_to_ptr.hbm [resolvable:$true] %s48_s17 }
   0x9   :  { %67 = dma.hbm_to_vmem [thread:$0]  %s63_s8, 16, %s65_s12, [#allocation9]  }
   0xa   :  { %s752_s18 = smov [#allocation2]   ;;  %s753_s4 = smov [#allocation7]  }
   0xb   :  { %s22_s19 = sshll.u32 %s752_s18, 4  ;;  %s50_s20 = sshll.u32 %s753_s4, 4  ;;  %s23_s19 = int_to_ptr.vmem [resolvable:$true] %s22_s19  ;;  %s51_s20 = int_to_ptr.vmem [resolvable:$true] %s50_s20 }
   0xc   :  { %28 = dma.hbm_to_vmem [thread:$0]  %s21_s15, 128, %s23_s19, [#allocation3], %s749_s9, %s749_s9, %s750_s10  }
   0xd   :  { %s72_s23 = sshll.u32 %s892_s5, 4  ;;  %s754_s0 = smov [#allocation10]   ;;  %s73_s23 = int_to_ptr.hbm [resolvable:$true] %s72_s23 }
   0xe   :  { %56 = dma.hbm_to_vmem [thread:$0]  %s49_s17, 512, %s51_s20, [#allocation6], %s749_s9, %s749_s9, %s750_s10  }
   0xf   :  { %s74_s24 = sshll.u32 %s754_s0, 4  ;;  %s755_s25 = smov 128   ;;  %s75_s24 = int_to_ptr.vmem [resolvable:$true] %s74_s24 }
  0x10   :  { %s756_s26 = smov 8  }
  0x11   :  { %80 = dma.hbm_to_vmem [thread:$0]  %s73_s23, 1024, %s75_s24, [#allocation9], %s755_s25, %s755_s25, %s756_s26  }
  0x12   :  { %740 = dma.done.wait [#allocation3], 128  }
  0x13   :  { %741 = vsyncadd [#allocation3], 4294967168 }
  0x14   :  { %742 = dma.done.wait [#allocation6], 768  }
  0x15   :  { %743 = vsyncadd [#allocation6], 4294966528 }
  0x16   :  { %744 = dma.done.wait [#allocation9], 1040  }
  0x17   :  { %745 = vsyncadd [#allocation9], 4294966256  ;;  %v561_v0 = vld [vmem:[#allocation5 + $0x8] sm:$0xff]  ;;  %v560_v1 = vld [vmem:[#allocation5] sm:$0xff]  ;;  %vm131_vm0 = vcmask 261120   ;;  %vm274_vm9 = vcmask 523264  }
  0x18   :  { %141 = vmatpush.bf16.msra.mxu0 %v561_v0  ;;  %v559_v2 = vld [vmem:[#allocation2] sm:$0xff]  ;;  %v565_v22 = vld [vmem:[#allocation7 + $0x18] sm:$0xff]  ;;  %v564_v30 = vld [vmem:[#allocation7 + $0x10] sm:$0xff]  ;;  %s757_s28 = smov [#allocation11]   ;;  %s476_s9 = sshll.u32 %s894_s7, 4  ;;  %s477_s9 = int_to_ptr.hbm [resolvable:$true] %s476_s9 }
  0x19   :  { %v586_v3 = vld [vmem:[%s889_s2] ss:$0 sm:$0xff]  ;;  %282 = vmatpush.bf16.msra.mxu1 %v565_v22  ;;  %v562_v44 = vld [vmem:[#allocation7] sm:$0xff]  ;;  %s474_s29 = sshll.u32 %s757_s28, 4  ;;  %s759_s10 = smov 16   ;;  %s475_s29 = int_to_ptr.vmem [resolvable:$true] %s474_s29 }
  0x1a   :  { %v563_v38 = vld [vmem:[#allocation7 + $0x8] sm:$0xff] }
  0x1c   :  { %142 = vmatpush.bf16.msra.mxu0 %v560_v1 }
  0x1d   :  { %283 = vmatpush.bf16.msra.mxu1 %v564_v30  ;;  %v587_v30 = vld [vmem:[#allocation8] ss:$0 sm:$0xff] }
  0x1f   :  { %503 = vmatmul.msk.bf16.vlgmr.msra.gmra.mxu0 %vm131_vm0, %v559_v2 }
  0x21   :  { %284 = vmatpush.bf16.msra.mxu1 %v563_v38 }
  0x25   :  { %285 = vmatpush.bf16.msra.mxu1 %v562_v44 }
  0x9c   :  { %v144_v4 = vpop.f32.mrf.mxu0 }
  0x9d   :  { %v818_v5 = vadd.f32 %v586_v3, %v144_v4 }
  0x9f   :  { %v821_v6 = vmul.f32 0.70710677, %v818_v5 }
  0xa1   :  { %v153_v7 = vmul.f32 %v821_v6, %v821_v6 }
  0xa3   :  { %v154_v8 = vmin.f32 %v153_v7, 16.0 }
  0xa4   :  { %v146_v9 = vpop.f32.mrf.mxu0 }
  0xa5   :  { %v155_v10 = vmul.f32 2.1237322e-06, %v154_v8  ;;  %v166_v11 = vmul.f32 3.8918573e-05, %v154_v8  ;;  %v825_v12 = vadd.f32 %v586_v3, %v146_v9 }
  0xa7   :  { %v156_v13 = vadd.f32 0.00028619796, %v155_v10  ;;  %v167_v14 = vadd.f32 0.001143296, %v166_v11  ;;  %v828_v15 = vmul.f32 0.70710677, %v825_v12 }
  0xa9   :  { %v168_v16 = vmul.f32 %v167_v14, %v154_v8  ;;  %v193_v17 = vmul.f32 %v828_v15, %v828_v15  ;;  %v157_v18 = vmul.f32 %v156_v13, %v154_v8 }
  0xab   :  { %v169_v19 = vadd.f32 0.014752088, %v168_v16  ;;  %v194_v20 = vmin.f32 %v193_v17, 16.0  ;;  %v158_v25 = vadd.f32 0.0036580483, %v157_v18 }
  0xad   :  { %v170_v21 = vmul.f32 %v169_v19, %v154_v8  ;;  %v195_v23 = vmul.f32 2.1237322e-06, %v194_v20  ;;  %v206_v24 = vmul.f32 3.8918573e-05, %v194_v20  ;;  %v159_v33 = vmul.f32 %v158_v25, %v154_v8 }
  0xae   :  { %v150_v25 = vmul.f32 0.5, %v825_v12 }
  0xaf   :  { %v171_v26 = vadd.f32 0.112945676, %v170_v21  ;;  %v196_v27 = vadd.f32 0.00028619796, %v195_v23  ;;  %v207_v28 = vadd.f32 0.001143296, %v206_v24 }
  0xb0   :  { %v160_v40 = vadd.f32 0.05243302, %v159_v33  ;;  %v149_v24 = vmul.f32 0.5, %v818_v5 }
  0xb1   :  { %v172_v29 = vmul.f32 %v171_v26, %v154_v8  ;;  %v197_v31 = vmul.f32 %v196_v27, %v194_v20  ;;  %v208_v32 = vmul.f32 %v207_v28, %v194_v20 }
  0xb2   :  { %v161_v46 = vmul.f32 %v160_v40, %v154_v8 }
  0xb3   :  { %v173_v34 = vadd.f32 0.4994258, %v172_v29  ;;  %v198_v35 = vadd.f32 0.0036580483, %v197_v31  ;;  %v209_v36 = vadd.f32 0.014752088, %v208_v32 }
  0xb4   :  { %v162_v51 = vadd.f32 0.18741608, %v161_v46  ;;  %v573_v46 = vld [vmem:[#allocation10 + $0x34] sm:$0xf0] }
  0xb5   :  { %v174_v37 = vmul.f32 %v173_v34, %v154_v8  ;;  %v210_v39 = vmul.f32 %v209_v36, %v194_v20  ;;  %v199_v42 = vmul.f32 %v198_v35, %v194_v20 }
  0xb6   :  { %v163_v56 = vmul.f32 %v162_v51, %v154_v8 }
  0xb7   :  { %v175_v41 = vadd.f32 1.0, %v174_v37  ;;  %v211_v43 = vadd.f32 0.112945676, %v210_v39  ;;  %v200_v47 = vadd.f32 0.05243302, %v199_v42 }
  0xb8   :  { %v164_v62 = vadd.f32 1.1283791, %v163_v56 }
  0xb9   :  { %588 = vrcp.f32 %v175_v41  ;;  %v212_v45 = vmul.f32 %v211_v43, %v194_v20  ;;  %v201_v53 = vmul.f32 %v200_v47, %v194_v20  ;;  %v187_v58 = vand.u32 2147483648, %v175_v41 }
  0xba   :  { %v185_v60 = vand.u32 2147483647, %v175_v41  ;;  %vm181_vm2 = vweird.f32 %v175_v41  ;;  %v165_v7 = vmul.f32 %v164_v62, %v821_v6  ;;  %v545_v62 = vld [vmem:[#allocation10 + $0x28] sm:$0xf0] }
  0xbb   :  { %v213_v48 = vadd.f32 0.4994258, %v212_v45  ;;  %v202_v59 = vadd.f32 0.18741608, %v201_v53  ;;  %v188_v1 = vor.u32 1.1754944e-38, %v187_v58 }
  0xbc   :  { %vm186_vm4 = vcmp.eq.f32.partialorder %v185_v60, 8.507059e+37  ;;  %v551_v45 = vld [vmem:[#allocation10 + $0x30] sm:$0xf]  ;;  %v543_v58 = vld [vmem:[#allocation10 + $0x20] sm:$0xf] }
  0xbd   :  { %v214_v49 = vmul.f32 %v213_v48, %v194_v20  ;;  %v203_v2 = vmul.f32 %v202_v59, %v194_v20  ;;  %v552_v48 = vor.u32 %v573_v46, %v551_v45  ;;  %v571_v60 = vld [vmem:[#allocation10 + $0x24] sm:$0xf0] }
  0xbf   :  { %v589_v50 = vpop.eup %588  ;;  %v215_v54 = vadd.f32 1.0, %v214_v49  ;;  %v204_v8 = vadd.f32 1.1283791, %v203_v2  ;;  %v572_v49 = vld [vmem:[#allocation10 + $0x34] sm:$0xf]  ;;  %442 = vmatpush.bf16.msra.mxu2 %v552_v48 }
  0xc0   :  { %v177_v52 = vmul.f32 %v589_v50, %v175_v41  ;;  %vm182_vm1 = vweird.f32 %v589_v50 }
  0xc1   :  { %590 = vrcp.f32 %v215_v54  ;;  %vm183_vm3 = vmor %vm181_vm2, %vm182_vm1  ;;  %v227_v10 = vand.u32 2147483648, %v215_v54  ;;  %v225_v14 = vand.u32 2147483647, %v215_v54  ;;  %vm221_vm6 = vweird.f32 %v215_v54 }
  0xc2   :  { %v178_v55 = vsub.f32 1.0, %v177_v52  ;;  %v205_v19 = vmul.f32 %v204_v8, %v828_v15  ;;  %v535_v8 = vld [vmem:[#allocation10 + $0x10] sm:$0xf] }
  0xc3   :  { %v228_v17 = vor.u32 1.1754944e-38, %v227_v10  ;;  %vm226_vm8 = vcmp.eq.f32.partialorder %v225_v14, 8.507059e+37  ;;  %v537_v14 = vld [vmem:[#allocation10 + $0x18] sm:$0xf0] }
  0xc4   :  { %v179_v57 = vmul.f32 %v589_v50, %v178_v55 }
  0xc6   :  { %v180_v61 = vadd.f32 %v589_v50, %v179_v57 }
  0xc7   :  { %v591_v63 = vpop.eup %590 }
  0xc8   :  { %v184_v0 = vsel %vm183_vm3, %v589_v50, %v180_v61  ;;  %v217_v3 = vmul.f32 %v591_v63, %v215_v54  ;;  %vm222_vm5 = vweird.f32 %v591_v63  ;;  %v553_v50 = vld [vmem:[#allocation10 + $0x38] sm:$0xf0]  ;;  %v570_v61 = vld [vmem:[#allocation10 + $0x24] sm:$0xf] }
  0xc9   :  { %v189_v4 = vsel %vm186_vm4, %v188_v1, %v184_v0  ;;  %vm223_vm7 = vmor %vm221_vm6, %vm222_vm5  ;;  %v556_v53 = vor.u32 %v572_v49, %v553_v50  ;;  %v544_v1 = vor.u32 %v571_v60, %v543_v58  ;;  %v548_v2 = vor.u32 %v570_v61, %v545_v62 }
  0xca   :  { %v218_v9 = vsub.f32 1.0, %v217_v3  ;;  %v190_v11 = vmul.f32 %v189_v4, %v165_v7 }
  0xcb   :  { %456 = vmatpush.bf16.msra.mxu3 %v556_v53  ;;  %443 = vmatpush.bf16.msra.mxu2 %v544_v1 }
  0xcc   :  { %v219_v13 = vmul.f32 %v591_v63, %v218_v9  ;;  %v504_v18 = vclamps-f32 %v190_v11, 1.0  ;;  %v569_v11 = vld [vmem:[#allocation10 + $0x14] sm:$0xf0] }
  0xce   :  { %v220_v16 = vadd.f32 %v591_v63, %v219_v13  ;;  %v233_v23 = vadd.f32 1.0, %v504_v18  ;;  %v568_v13 = vld [vmem:[#allocation10 + $0x14] sm:$0xf] }
  0xcf   :  { %457 = vmatpush.bf16.msra.mxu3 %v548_v2  ;;  %v540_v18 = vor.u32 %v568_v13, %v537_v14 }
  0xd0   :  { %v224_v20 = vsel %vm223_vm7, %v591_v63, %v220_v16  ;;  %v235_v27 = vmul.f32 %v233_v23, %v149_v24  ;;  %v527_v23 = vld [vmem:[#allocation10] sm:$0xf]  ;;  %v566_v24 = vld [vmem:[#allocation10 + $0x4] sm:$0xf] }
  0xd1   :  { %v229_v21 = vsel %vm226_vm8, %v228_v17, %v224_v20  ;;  %v536_v17 = vor.u32 %v569_v11, %v535_v8 }
  0xd2   :  { %v230_v22 = vmul.f32 %v229_v21, %v205_v19 }
  0xd3   :  { %444 = vmatpush.bf16.msra.mxu2 %v536_v17  ;;  %458 = vmatpush.bf16.msra.mxu3 %v540_v18 }
  0xd4   :  { %v505_v6 = vclamps-f32 %v230_v22, 1.0 }
  0xd6   :  { %v234_v26 = vadd.f32 1.0, %v505_v6  ;;  %v567_v6 = vld [vmem:[#allocation10 + $0x4] sm:$0xf0] }
  0xd8   :  { %v236_v28 = vmul.f32 %v234_v26, %v150_v25  ;;  %v528_v26 = vor.u32 %v567_v6, %v527_v23 }
  0xda   :  { %v237_v29 = vpack.c.bf16 %v236_v28, %v235_v27  ;;  %v529_v27 = vld [vmem:[#allocation10 + $0x8] sm:$0xf0]  ;;  %445 = vmatpush.bf16.msra.mxu2 %v528_v26 }
  0xdc   :  { %522 = vmatmul.msk.bf16.vlgmr.msra.gmra.mxu1 %vm274_vm9, %v237_v29  ;;  %v532_v29 = vor.u32 %v566_v24, %v529_v27 }
  0xde   :  { %459 = vmatpush.bf16.msra.mxu3 %v532_v29 }
 0x159   :  { %v287_v31 = vpop.f32.mrf.mxu1 }
 0x15a   :  { %v837_v15 = vadd.f32 %v587_v30, %v287_v31 }
 0x15c   :  { %v840_v32 = vmul.f32 0.70710677, %v837_v15 }
 0x15e   :  { %v296_v33 = vmul.f32 %v840_v32, %v840_v32 }
 0x160   :  { %v844_v5 = vmin.f32 %v296_v33, 16.0 }
 0x161   :  { %v289_v12 = vpop.f32.mrf.mxu1 }
 0x162   :  { %v298_v34 = vmul.f32 2.1237322e-06, %v844_v5  ;;  %v309_v35 = vmul.f32 3.8918573e-05, %v844_v5  ;;  %v848_v36 = vadd.f32 %v587_v30, %v289_v12 }
 0x164   :  { %v299_v37 = vadd.f32 0.00028619796, %v298_v34  ;;  %v310_v38 = vadd.f32 0.001143296, %v309_v35  ;;  %v851_v39 = vmul.f32 0.70710677, %v848_v36 }
 0x166   :  { %v311_v40 = vmul.f32 %v310_v38, %v844_v5  ;;  %v336_v41 = vmul.f32 %v851_v39, %v851_v39  ;;  %v300_v42 = vmul.f32 %v299_v37, %v844_v5 }
 0x168   :  { %v312_v43 = vadd.f32 0.014752088, %v311_v40  ;;  %v857_v44 = vmin.f32 %v336_v41, 16.0  ;;  %v301_v54 = vadd.f32 0.0036580483, %v300_v42 }
 0x16a   :  { %v313_v47 = vmul.f32 %v312_v43, %v844_v5  ;;  %v338_v51 = vmul.f32 2.1237322e-06, %v857_v44  ;;  %v349_v52 = vmul.f32 3.8918573e-05, %v857_v44  ;;  %v302_v3 = vmul.f32 %v301_v54, %v844_v5 }
 0x16c   :  { %v314_v55 = vadd.f32 0.112945676, %v313_v47  ;;  %v339_v56 = vadd.f32 0.00028619796, %v338_v51  ;;  %v350_v57 = vadd.f32 0.001143296, %v349_v52 }
 0x16d   :  { %v303_v19 = vadd.f32 0.05243302, %v302_v3 }
 0x16e   :  { %v315_v59 = vmul.f32 %v314_v55, %v844_v5  ;;  %v340_v63 = vmul.f32 %v339_v56, %v857_v44  ;;  %v351_v0 = vmul.f32 %v350_v57, %v857_v44 }
 0x16f   :  { %v304_v28 = vmul.f32 %v303_v19, %v844_v5 }
 0x170   :  { %v316_v4 = vadd.f32 0.4994258, %v315_v59  ;;  %v341_v7 = vadd.f32 0.0036580483, %v340_v63  ;;  %v352_v9 = vadd.f32 0.014752088, %v351_v0 }
 0x171   :  { %v305_v34 = vadd.f32 0.18741608, %v304_v28 }
 0x172   :  { %v317_v10 = vmul.f32 %v316_v4, %v844_v5  ;;  %v353_v16 = vmul.f32 %v352_v9, %v857_v44  ;;  %v342_v21 = vmul.f32 %v341_v7, %v857_v44  ;;  %v292_v4 = vmul.f32 0.5, %v837_v15 }
 0x173   :  { %v306_v41 = vmul.f32 %v305_v34, %v844_v5  ;;  %v293_v7 = vmul.f32 0.5, %v848_v36 }
 0x174   :  { %v318_v20 = vadd.f32 1.0, %v317_v10  ;;  %v354_v22 = vadd.f32 0.112945676, %v353_v16  ;;  %v343_v30 = vadd.f32 0.05243302, %v342_v21 }
 0x175   :  { %v307_v48 = vadd.f32 1.1283791, %v306_v41 }
 0x176   :  { %592 = vrcp.f32 %v318_v20  ;;  %v355_v25 = vmul.f32 %v354_v22, %v857_v44  ;;  %v344_v37 = vmul.f32 %v343_v30, %v857_v44  ;;  %v330_v43 = vand.u32 2147483648, %v318_v20 }
 0x177   :  { %v328_v46 = vand.u32 2147483647, %v318_v20  ;;  %vm324_vm11 = vweird.f32 %v318_v20  ;;  %v308_v55 = vmul.f32 %v307_v48, %v840_v32 }
 0x178   :  { %v356_v31 = vadd.f32 0.4994258, %v355_v25  ;;  %v345_v45 = vadd.f32 0.18741608, %v344_v37  ;;  %v331_v51 = vor.u32 1.1754944e-38, %v330_v43 }
 0x179   :  { %vm329_vm13 = vcmp.eq.f32.partialorder %v328_v46, 8.507059e+37 }
 0x17a   :  { %v357_v33 = vmul.f32 %v356_v31, %v857_v44  ;;  %v346_v52 = vmul.f32 %v345_v45, %v857_v44 }
 0x17c   :  { %v593_v12 = vpop.eup %592  ;;  %v358_v38 = vadd.f32 1.0, %v357_v33  ;;  %v347_v56 = vadd.f32 1.1283791, %v346_v52 }
 0x17d   :  { %v320_v35 = vmul.f32 %v593_v12, %v318_v20  ;;  %vm325_vm10 = vweird.f32 %v593_v12 }
 0x17e   :  { %594 = vrcp.f32 %v358_v38  ;;  %vm326_vm12 = vmor %vm324_vm11, %vm325_vm10  ;;  %v370_v57 = vand.u32 2147483648, %v358_v38  ;;  %v368_v60 = vand.u32 2147483647, %v358_v38  ;;  %vm364_vm15 = vweird.f32 %v358_v38 }
 0x17f   :  { %v321_v40 = vsub.f32 1.0, %v320_v35  ;;  %v348_v0 = vmul.f32 %v347_v56, %v851_v39  ;;  %v389_v39 = vld [vmem:[%s893_s6] sm:$0x3]  ;;  %s758_s6 = smov 256  }
 0x180   :  { %v371_v62 = vor.u32 1.1754944e-38, %v370_v57  ;;  %vm369_vm1 = vcmp.eq.f32.partialorder %v368_v60, 8.507059e+37  ;;  %v391_v13 = vperm.slane %v389_v39, 0  ;;  %v392_v14 = vperm.slane %v389_v39, 1 }
 0x181   :  { %v322_v42 = vmul.f32 %v593_v12, %v321_v40 }
 0x183   :  { %v323_v47 = vadd.f32 %v593_v12, %v322_v42 }
 0x184   :  { %v595_v49 = vpop.eup %594 }
 0x185   :  { %v327_v50 = vsel %vm326_vm12, %v593_v12, %v323_v47  ;;  %v360_v53 = vmul.f32 %v595_v49, %v358_v38  ;;  %vm365_vm14 = vweird.f32 %v595_v49 }
 0x186   :  { %v332_v54 = vsel %vm329_vm13, %v331_v51, %v327_v50  ;;  %vm366_vm0 = vmor %vm364_vm15, %vm365_vm14 }
 0x187   :  { %v361_v5 = vsub.f32 1.0, %v360_v53  ;;  %v333_v58 = vmul.f32 %v332_v54, %v308_v55 }
 0x189   :  { %v362_v59 = vmul.f32 %v595_v49, %v361_v5  ;;  %v523_v63 = vclamps-f32 %v333_v58, 1.0 }
 0x18b   :  { %v363_v61 = vadd.f32 %v595_v49, %v362_v59  ;;  %v376_v3 = vadd.f32 1.0, %v523_v63 }
 0x18d   :  { %v367_v44 = vsel %vm366_vm0, %v595_v49, %v363_v61  ;;  %v378_v8 = vmul.f32 %v376_v3, %v292_v4 }
 0x18e   :  { %v372_v1 = vsel %vm369_vm1, %v371_v62, %v367_v44 }
 0x18f   :  { %v373_v2 = vmul.f32 %v372_v1, %v348_v0 }
 0x191   :  { %v524_v32 = vclamps-f32 %v373_v2, 1.0 }
 0x193   :  { %v377_v9 = vadd.f32 1.0, %v524_v32 }
 0x195   :  { %v379_v10 = vmul.f32 %v377_v9, %v293_v7 }
 0x197   :  { %v380_v11 = vpack.c.bf16 %v379_v10, %v378_v8 }
 0x199   :  { %557 = vmatmul.msk.bf16.vlgmr.msra.gmra.mxu2 %vm274_vm9, %v380_v11  ;;  %558 = vmatmul.msk.bf16.vlgmr.msra.gmra.mxu3 %vm274_vm9, %v380_v11 }
 0x21c   :  { %v447_v16 = vpop.f32.mrf.mxu2  ;;  %v461_v17 = vpop.f32.mrf.mxu3 }
 0x21d   :  { %v448_v18 = vadd.f32 %v447_v16, %v391_v13  ;;  %v462_v15 = vadd.f32 %v461_v17, %v392_v14 }
 0x21f   :  { %466 = vst [vmem:[#allocation11] sm:$0xff] %v448_v18 }
 0x220   :  { %467 = vst [vmem:[#allocation11 + $0x8] sm:$0xff] %v462_v15 }
 0x224   :  { %v449_v36 = vpop.f32.mrf.mxu2  ;;  %v463_v19 = vpop.f32.mrf.mxu3 }
 0x225   :  { %v450_v20 = vadd.f32 %v449_v36, %v391_v13  ;;  %v464_v21 = vadd.f32 %v463_v19, %v392_v14 }
 0x227   :  { %468 = vst [vmem:[#allocation11 + $0x10] sm:$0xff] %v450_v20 }
 0x228   :  { %469 = vst [vmem:[#allocation11 + $0x18] sm:$0xff] %v464_v21 }
 0x229   :  { %482 = dma.vmem_to_hbm [thread:$0]  %s475_s29, 512, %s477_s9, [#allocation4], %s758_s6, %s758_s6, %s759_s10  }
 0x22a   :  { %746 = dma.done.wait [#allocation4], 512  }
 0x22b   :  { %747 = vsyncadd [#allocation4], 4294966784 }
 0x22c   :  { %487 = vsyncpa [#allocation3], 1 }
 0x22d   :  { %488 = vsyncpa [#allocation6], 1 }
 0x22e   :  { %489 = vsyncpa [#allocation9], 1 }
 0x22f   :  { %490 = vsyncpa [#allocation4], 1 }

</bundles_post_ra>
